<compile_context>
chip_gen: v6e
topology: v6e:2x2x1
jax: 0.10.0
libtpu: 0.0.40
codegen_flags: <defaults>
</compile_context>

<pallas_src>
import math

import jax
import jax.numpy as jnp
from jax.experimental import pallas as pl
from jax.experimental.pallas import tpu as pltpu

_INV_SQRT2 = 1.0 / math.sqrt(2.0)


def _round_up(x, m):
    return ((x + m - 1) // m) * m


def _cdiv(a, b):
    return (a + b - 1) // b


def _device_kind():
    try:
        return jax.devices()[0].device_kind.lower()
    except Exception:
        return ""


def _default_tiles(kind):
    # Per-k-step intensity with the interleaved weight = 2*tm*tn/(tm+2*tn):
    #   v6e  (918 TF/s, ~1.4 TB/s, 128 MiB VMEM): 1024-class tiles -> ~683 FLOP/B
    #   v7x  (996 TF/s,  3.2 TB/s,  64 MiB VMEM):  512-class tiles -> ~341 FLOP/B
    #   v5e  (197 TF/s, ~0.82 TB/s,128 MiB VMEM):  512-class tiles -> ~341 FLOP/B
    if "v6" in kind:
        return 1024, 1024, 1024
    return 512, 512, 1024


def select_nk_tiles(dim_in, dim_out, tile_n=None, tile_k=None):
    """Pick (tile_n, tile_k); must be used consistently by prep and the kernel call."""
    kind = _device_kind()
    _, d_n, d_k = _default_tiles(kind)
    tile_n = d_n if tile_n is None else tile_n
    tile_k = d_k if tile_k is None else tile_k
    tile_n = max(128, min(_round_up(tile_n, 128), _round_up(dim_out, 128)))
    tile_k = max(128, min(_round_up(tile_k, 128), _round_up(dim_in, 128)))
    return tile_n, tile_k


def _select_m_tile(M, tile_m, kind):
    d_m, _, _ = _default_tiles(kind)
    tile_m = d_m if tile_m is None else tile_m
    tile_m = max(8, min(_round_up(tile_m, 8), _round_up(M, 8)))
    # v7x has 2 TensorCores: make sure the "parallel" M axis has >= 2 blocks
    # when the whole (small) M extent would otherwise land in one tile.
    if "v7" in kind:
        mp = _round_up(M, 8)
        if mp <= tile_m and mp >= 16:
            tile_m = max(8, _round_up(_cdiv(mp, 2), 8))
    return tile_m


def prepare_geglu_params(w, b, *, tile_n, tile_k, compute_dtype=jnp.bfloat16):
    """One-time (parameter-load-time) weight/bias prep.

    Pads to tile multiples, block-interleaves value/gate column blocks so a
    single BlockSpec of width 2*tile_n carries both halves, and casts the
    weight to the matmul compute dtype.  Returns (w_prep (Kp, 2*Np) compute
    dtype, b_prep (1, 2*Np) float32).
    """
    dim_in, two_do = w.shape
    dim_out = two_do // 2
    Np = _round_up(dim_out, tile_n)
    Kp = _round_up(dim_in, tile_k)
    n_blocks = Np // tile_n

    w_v = jnp.pad(w[:, :dim_out], ((0, Kp - dim_in), (0, Np - dim_out)))
    w_g = jnp.pad(w[:, dim_out:], ((0, Kp - dim_in), (0, Np - dim_out)))
    # block-interleave: column block j is [value cols j*tn:(j+1)*tn | gate cols ...]
    w_v = w_v.reshape(Kp, n_blocks, tile_n)
    w_g = w_g.reshape(Kp, n_blocks, tile_n)
    w_prep = jnp.concatenate([w_v, w_g], axis=-1).reshape(Kp, 2 * Np)
    if compute_dtype is not None:
        w_prep = w_prep.astype(compute_dtype)

    b_f32 = b.astype(jnp.float32)
    b_v = jnp.pad(b_f32[:dim_out], (0, Np - dim_out)).reshape(n_blocks, tile_n)
    b_g = jnp.pad(b_f32[dim_out:], (0, Np - dim_out)).reshape(n_blocks, tile_n)
    b_prep = jnp.concatenate([b_v, b_g], axis=-1).reshape(1, 2 * Np)
    return w_prep, b_prep


def _geglu_kernel(x_ref, w_ref, b_ref, o_ref, acc_ref):
    k = pl.program_id(2)

    # One fused matmul covering both the value and gate halves (MXU, f32 acc).
    p = jnp.dot(x_ref[...], w_ref[...], preferred_element_type=jnp.float32)

    @pl.when(k == 0)
    def _first():
        acc_ref[...] = p          # direct assign: no zero-init round-trip

    @pl.when(k != 0)
    def _rest():
        acc_ref[...] += p

    @pl.when(k == pl.num_programs(2) - 1)
    def _finalize():
        tn = acc_ref.shape[-1] // 2
        acc = acc_ref[...] + b_ref[...]
        h = acc[:, :tn]           # value half  (static, 128-aligned slice)
        g = acc[:, tn:]           # gate half
        # exact (erf) GELU to match torch F.gelu default, all in f32
        gelu_g = 0.5 * g * (1.0 + jax.lax.erf(g * _INV_SQRT2))
        o_ref[...] = (h * gelu_g).astype(o_ref.dtype)


def geglu_prepared(x, w_prep, b_prep, dim_out, *, tile_n, tile_k, tile_m=None,
                   compute_dtype=jnp.bfloat16, out_dtype=None):
    """Hot-path GEGLU: x (B,S,dim_in), w_prep/b_prep from prepare_geglu_params."""
    B, S, dim_in = x.shape
    M = B * S
    kind = _device_kind()
    tile_m = _select_m_tile(M, tile_m, kind)

    Kp, two_Np = w_prep.shape
    Np = two_Np // 2
    assert Kp == _round_up(dim_in, tile_k), "weight prepared with different tile_k"
    assert Np == _round_up(dim_out, tile_n), "weight prepared with different tile_n"

    Mp = _round_up(M, tile_m)
    m_blocks = Mp // tile_m
    n_blocks = Np // tile_n
    k_blocks = Kp // tile_k

    x2d = x.reshape(M, dim_in)
    if (Mp, Kp) != (M, dim_in):
        x2d = jnp.pad(x2d, ((0, Mp - M), (0, Kp - dim_in)))
    if compute_dtype is not None:
        x2d = x2d.astype(compute_dtype)

    out_dtype = x.dtype if out_dtype is None else out_dtype

    # VMEM budget derived from the actual tile footprint (double-buffered
    # inputs/outputs + the single f32 accumulator) plus headroom.
    x_item = jnp.dtype(x2d.dtype).itemsize
    w_item = jnp.dtype(w_prep.dtype).itemsize
    o_item = jnp.dtype(out_dtype).itemsize
    vmem_needed = (2 * (tile_m * tile_k * x_item
                        + tile_k * 2 * tile_n * w_item
                        + 2 * tile_n * 4)
                   + 2 * tile_m * tile_n * o_item
                   + tile_m * 2 * tile_n * 4)
    vmem_cap = (100 << 20) if ("v5" in kind or "v6" in kind) else (48 << 20)
    vmem_limit = min(int(vmem_needed * 1.25) + (8 << 20), vmem_cap)

    cost = pl.CostEstimate(
        flops=2 * Mp * Kp * 2 * Np,
        transcendentals=Mp * Np,
        bytes_accessed=(Mp * Kp * x_item * n_blocks          # x re-read per n block
                        + Kp * 2 * Np * w_item * m_blocks    # w re-read per m block
                        + 2 * Np * 4
                        + Mp * Np * o_item),
    )

    out2d = pl.pallas_call(
        _geglu_kernel,
        out_shape=jax.ShapeDtypeStruct((Mp, Np), out_dtype),
        grid_spec=pltpu.PrefetchScalarGridSpec(
            num_scalar_prefetch=0,
            grid=(m_blocks, n_blocks, k_blocks),
            in_specs=[
                pl.BlockSpec((tile_m, tile_k), lambda i, j, k: (i, k)),       # x tile
                pl.BlockSpec((tile_k, 2 * tile_n), lambda i, j, k: (k, j)),   # interleaved W
                pl.BlockSpec((1, 2 * tile_n), lambda i, j, k: (0, j)),        # interleaved bias
            ],
            out_specs=pl.BlockSpec((tile_m, tile_n), lambda i, j, k: (i, j)),
            scratch_shapes=[
                pltpu.VMEM((tile_m, 2 * tile_n), jnp.float32),                # fused accumulator
            ],
        ),
        compiler_params=pltpu.CompilerParams(
            dimension_semantics=("parallel", "parallel", "arbitrary"),
            vmem_limit_bytes=vmem_limit,
        ),
        cost_estimate=cost,
    )(x2d, w_prep, b_prep)

    return out2d[:M, :dim_out].reshape(B, S, dim_out)


def geglu(x, w, b, *, tile_m=None, tile_n=None, tile_k=None,
          compute_dtype=jnp.bfloat16, out_dtype=None):
    """Convenience one-shot wrapper (prep + kernel).  For repeated calls,
    prepare the params once with prepare_geglu_params and call geglu_prepared."""
    dim_out = w.shape[1] // 2
    tile_n, tile_k = select_nk_tiles(x.shape[-1], dim_out, tile_n, tile_k)
    w_prep, b_prep = prepare_geglu_params(w, b, tile_n=tile_n, tile_k=tile_k,
                                          compute_dtype=compute_dtype)
    return geglu_prepared(x, w_prep, b_prep, dim_out,
                          tile_n=tile_n, tile_k=tile_k, tile_m=tile_m,
                          compute_dtype=compute_dtype, out_dtype=out_dtype)


if __name__ == "__main__":
    # small shapes implied by the module: (batch, seq, dim_in) -> (batch, seq, dim_out)
    batch, seq, dim_in, dim_out = 2, 8, 32, 32

    key = jax.random.PRNGKey(0)
    kx, kw, kb = jax.random.split(key, 3)

    x = jax.random.normal(kx, (batch, seq, dim_in), dtype=jnp.float32)

    # deterministic nn.Linear-style init: U(-1/sqrt(dim_in), 1/sqrt(dim_in))
    bound = 1.0 / math.sqrt(dim_in)
    w = jax.random.uniform(kw, (dim_in, 2 * dim_out), jnp.float32, -bound, bound)
    b = jax.random.uniform(kb, (2 * dim_out,), jnp.float32, -bound, bound)

    # Hot-path usage: prepare weight/bias once (padding, value/gate interleave,
    # bf16 cast), then only the activation is touched per call.
    tile_n, tile_k = select_nk_tiles(dim_in, dim_out)
    w_prep, b_prep = prepare_geglu_params(w, b, tile_n=tile_n, tile_k=tile_k)
    out = geglu_prepared(x, w_prep, b_prep, dim_out, tile_n=tile_n, tile_k=tile_k)
    jax.block_until_ready(out)

    # The convenience wrapper must agree with the prepared path.
    out2 = geglu(x, w, b)
    jax.block_until_ready(out2)
    assert jnp.allclose(out, out2, atol=1e-6, rtol=0), "prepared vs one-shot mismatch"

    # Reference matching the kernel's bf16-input / f32-accumulate matmul.
    xb = x.astype(jnp.bfloat16).astype(jnp.float32)
    wb = w.astype(jnp.bfloat16).astype(jnp.float32)
    proj = xb @ wb + b
    h_ref, g_ref = proj[..., :dim_out], proj[..., dim_out:]
    ref = h_ref * (0.5 * g_ref * (1.0 + jax.lax.erf(g_ref / math.sqrt(2.0))))
    assert jnp.allclose(out, ref, atol=2e-3, rtol=2e-3), "mismatch vs bf16-rounded reference"

    # Coarse sanity check against the pure-f32 math of the original module.
    proj32 = x @ w + b
    h32, g32 = proj32[..., :dim_out], proj32[..., dim_out:]
    ref32 = h32 * (0.5 * g32 * (1.0 + jax.lax.erf(g32 / math.sqrt(2.0))))
    assert jnp.allclose(out, ref32, atol=5e-2, rtol=5e-2), "mismatch vs f32 reference"

    print("KERNEL_OK")
</pallas_src>

<mosaic_0001>
module attributes {stable_mosaic.version = 11 : i64} {
  func.func @_geglu_kernel(%arg0: i32, %arg1: i32, %arg2: i32, %arg3: memref<16x128xbf16, #tpu.memory_space<vmem>>, %arg4: memref<128x256xbf16, #tpu.memory_space<vmem>>, %arg5: memref<1x256xf32, #tpu.memory_space<vmem>>, %arg6: memref<16x128xf32, #tpu.memory_space<vmem>>, %arg7: memref<16x256xf32, #tpu.memory_space<vmem>>) attributes {dimension_semantics = [#tpu.dimension_semantics<parallel>, #tpu.dimension_semantics<parallel>, #tpu.dimension_semantics<arbitrary>], iteration_bounds = array<i64: 1, 1, 1>, scalar_prefetch = 0 : i64, scratch_operands = 1 : i64, tpu.core_type = #tpu.core_type<tc>, window_params = [{transform_indices = @transform_0, window_bounds = array<i64: 16, 128>}, {transform_indices = @transform_1, window_bounds = array<i64: 128, 256>}, {transform_indices = @transform_2, window_bounds = array<i64: 1, 256>}, {transform_indices = @transform_3, window_bounds = array<i64: 16, 128>}]} {
    %c0 = arith.constant 0 : index
    %c0_0 = arith.constant 0 : index
    %0 = vector.load %arg3[%c0, %c0_0] : memref<16x128xbf16, #tpu.memory_space<vmem>>, vector<16x128xbf16>
    %c0_1 = arith.constant 0 : index
    %c0_2 = arith.constant 0 : index
    %1 = vector.load %arg4[%c0_1, %c0_2] : memref<128x256xbf16, #tpu.memory_space<vmem>>, vector<128x256xbf16>
    %cst = arith.constant dense<0.000000e+00> : vector<16x256xf32>
    %2 = tpu.matmul %0, %1, %cst {dimension_numbers = #tpu.dot_dimension_numbers<[1], [0], [0], [1], [0, 0, 1, 1], [], []>} : vector<16x128xbf16>, vector<128x256xbf16>, vector<16x256xf32> -> vector<16x256xf32>
    %c0_i32 = arith.constant 0 : i32
    %3 = arith.cmpi eq, %arg2, %c0_i32 : i32
    %4 = arith.extui %3 : i1 to i32
    %c0_i32_3 = arith.constant 0 : i32
    %5 = arith.cmpi ne, %4, %c0_i32_3 : i32
    scf.if %5 {
      %c0_8 = arith.constant 0 : index
      %c0_9 = arith.constant 0 : index
      %12 = vector.load %arg7[%c0_8, %c0_9] : memref<16x256xf32, #tpu.memory_space<vmem>>, vector<16x256xf32>
      tpu.vector_store %arg7[%c0_8, %c0_9], %2 {strides = array<i32>} : memref<16x256xf32, #tpu.memory_space<vmem>>, vector<16x256xf32>,
    } else {
    }
    %c0_i32_4 = arith.constant 0 : i32
    %6 = arith.cmpi ne, %arg2, %c0_i32_4 : i32
    %7 = arith.extui %6 : i1 to i32
    %c0_i32_5 = arith.constant 0 : i32
    %8 = arith.cmpi ne, %7, %c0_i32_5 : i32
    scf.if %8 {
      %c0_8 = arith.constant 0 : index
      %c0_9 = arith.constant 0 : index
      %12 = vector.load %arg7[%c0_8, %c0_9] : memref<16x256xf32, #tpu.memory_space<vmem>>, vector<16x256xf32>
      %13 = arith.addf %12, %2 : vector<16x256xf32>
      %c0_10 = arith.constant 0 : index
      %c0_11 = arith.constant 0 : index
      %14 = vector.load %arg7[%c0_10, %c0_11] : memref<16x256xf32, #tpu.memory_space<vmem>>, vector<16x256xf32>
      tpu.vector_store %arg7[%c0_10, %c0_11], %13 {strides = array<i32>} : memref<16x256xf32, #tpu.memory_space<vmem>>, vector<16x256xf32>,
    } else {
    }
    %c0_i32_6 = arith.constant 0 : i32
    %9 = arith.cmpi eq, %arg2, %c0_i32_6 : i32
    %10 = arith.extui %9 : i1 to i32
    %c0_i32_7 = arith.constant 0 : i32
    %11 = arith.cmpi ne, %10, %c0_i32_7 : i32
    scf.if %11 {
      %c0_8 = arith.constant 0 : index
      %c0_9 = arith.constant 0 : index
      %12 = vector.load %arg7[%c0_8, %c0_9] : memref<16x256xf32, #tpu.memory_space<vmem>>, vector<16x256xf32>
      %c0_10 = arith.constant 0 : index
      %c0_11 = arith.constant 0 : index
      %13 = vector.load %arg5[%c0_10, %c0_11] : memref<1x256xf32, #tpu.memory_space<vmem>>, vector<1x256xf32>
      %14 = vector.broadcast %13 : vector<1x256xf32> to vector<16x256xf32>
      %15 = arith.addf %12, %14 : vector<16x256xf32>
      %16 = vector.extract_strided_slice %15 {offsets = [0, 0], sizes = [16, 128], strides = [1, 1]} : vector<16x256xf32> to vector<16x128xf32>
      %17 = vector.extract_strided_slice %15 {offsets = [0, 128], sizes = [16, 128], strides = [1, 1]} : vector<16x256xf32> to vector<16x128xf32>
      %cst_12 = arith.constant 5.000000e-01 : f32
      %18 = vector.broadcast %cst_12 : f32 to vector<16x128xf32>
      %19 = arith.mulf %18, %17 : vector<16x128xf32>
      %cst_13 = arith.constant 0.707106769 : f32
      %20 = vector.broadcast %cst_13 : f32 to vector<16x128xf32>
      %21 = arith.mulf %17, %20 : vector<16x128xf32>
      %22 = math.erf %21 : vector<16x128xf32>
      %cst_14 = arith.constant 1.000000e+00 : f32
      %23 = vector.broadcast %cst_14 : f32 to vector<16x128xf32>
      %24 = arith.addf %23, %22 : vector<16x128xf32>
      %25 = arith.mulf %19, %24 : vector<16x128xf32>
      %26 = arith.mulf %16, %25 : vector<16x128xf32>
      %c0_15 = arith.constant 0 : index
      %c0_16 = arith.constant 0 : index
      %27 = vector.load %arg6[%c0_15, %c0_16] : memref<16x128xf32, #tpu.memory_space<vmem>>, vector<16x128xf32>
      tpu.vector_store %arg6[%c0_15, %c0_16], %26 {strides = array<i32>} : memref<16x128xf32, #tpu.memory_space<vmem>>, vector<16x128xf32>,
    } else {
    }
    return
  }
  func.func @transform_0(%arg0: i32, %arg1: i32, %arg2: i32) -> (i32, i32) {
    %c0_i32 = arith.constant 0 : i32
    return %arg0, %arg2 : i32, i32
  }
  func.func @transform_1(%arg0: i32, %arg1: i32, %arg2: i32) -> (i32, i32) {
    %c0_i32 = arith.constant 0 : i32
    return %arg2, %arg1 : i32, i32
  }
  func.func @transform_2(%arg0: i32, %arg1: i32, %arg2: i32) -> (i32, i32) {
    %c0_i32 = arith.constant 0 : i32
    %c0_i32_0 = arith.constant 0 : i32
    return %c0_i32, %arg1 : i32, i32
  }
  func.func @transform_3(%arg0: i32, %arg1: i32, %arg2: i32) -> (i32, i32) {
    %c0_i32 = arith.constant 0 : i32
    return %arg0, %arg1 : i32, i32
  }
}

</mosaic_0001>

<bundles_post_ra>
// kernel: tpu_custom_call.1
= control target key start
LH: loop header
LB: loop body
LE: loop exit
PB: predicated region body
PF: predicated region fallthrough
CT: control target
= control target key end

     0   :  { %8 = vsyncpa [#allocation4], 0  ;;  %s436_s0 = inlined_call_operand.hbm [shape: bf16[16,128], index: 0, kind: input, shape index: {}]   ;;  %s437_s1 = inlined_call_operand.hbm [shape: bf16[128,256], index: 1, kind: input, shape index: {}]   ;;  %s438_s2 = inlined_call_operand.vmem [shape: f32[1,256], index: 2, kind: input, shape index: {}]   ;;  %s439_s3 = inlined_call_operand.hbm [shape: f32[16,128], index: 3, kind: output, shape index: {}]  }
   0x1   :  { %9 = vsyncpa [#allocation7], 0 }
   0x2   :  { %10 = vsyncpa [#allocation5], 0  ;;  %s390_s12 = smov [#allocation3]  }
   0x3   :  { %s16_s13 = sshll.u32 %s390_s12, 4  ;;  %s17_s13 = int_to_ptr.vmem [resolvable:$true] %s16_s13 }
   0x4   :  { %s332_s14 = scalar_lea.vmem %s17_s13, 128  ;;  %p337_p1 = scmp.lt.s32.totalorder %s17_s13, %s17_s13 }
   0x5   :  { %p333_p0 = scmp.ne.s32.totalorder %s17_s13, %s332_s14  ;;  %p338_p2 = scmp.lt.s32.totalorder %s332_s14, %s332_s14 }
   0x7   :  { %p339_p3 = por %p338_p2, %p337_p1 }
   0x9   :  { %p340_p4 = pnand %p339_p3, %p333_p0 }
   0xb   :  { %343 = shalt.err (!%p340_p4)
}
   0xc   :  { %s391_s15 = smov 64   ;;  %s392_s16 = smov 4  }
   0xd   :  { %22 = dma.hbm_to_vmem [thread:$0]  %s436_s0, 128, %s17_s13, [#allocation4], %s391_s15, %s391_s15, %s392_s16  }
   0xe   :  { %s393_s19 = smov [#allocation6]  }
   0xf   :  { %s28_s20 = sshll.u32 %s393_s19, 4  ;;  %s29_s20 = int_to_ptr.vmem [resolvable:$true] %s28_s20 }
  0x10   :  { %s352_s21 = scalar_lea.vmem %s29_s20, 2048  ;;  %p357_p6 = scmp.lt.s32.totalorder %s29_s20, %s29_s20 }
  0x11   :  { %p353_p5 = scmp.ne.s32.totalorder %s29_s20, %s352_s21  ;;  %p358_p7 = scmp.lt.s32.totalorder %s352_s21, %s352_s21 }
  0x13   :  { %p359_p8 = por %p358_p7, %p357_p6 }
  0x15   :  { %p360_p9 = pnand %p359_p8, %p353_p5 }
  0x17   :  { %363 = shalt.err (!%p360_p9)
}
  0x18   :  { %s394_s22 = smov 128   ;;  %s395_s23 = smov 8  }
  0x19   :  { %34 = dma.hbm_to_vmem [thread:$0]  %s437_s1, 2048, %s29_s20, [#allocation7], %s394_s22, %s394_s22, %s395_s23  }
  0x1a   :  { %384 = dma.done.wait [#allocation4], 128  }
  0x1b   :  { %385 = vsyncadd [#allocation4], 4294967168 }
  0x1c   :  { %386 = dma.done.wait [#allocation7], 2048  }
  0x1d   :  { %387 = vsyncadd [#allocation7], 4294965248  ;;  %v396_v0 = vmov 0   ;;  %v295_v1 = vld [vmem:[#allocation6 + $0x74] ss:$8 sps:$4 sm:$0xff]   ;;  %v224_v18 = vlaneseq }
  0x1e   :  { %180 = vmatprep.mubr.bf16.mxu0 %v396_v0  ;;  %v297_v2 = vld [vmem:[#allocation6 + $0x70] ss:$8 sps:$4 sm:$0xff]   ;;  %148 = vmatprep.subr.bf16.mxu0 %v295_v1  ;;  %v298_v3 = vld [vmem:[#allocation6 + $0x64] ss:$8 sps:$4 sm:$0xff]   ;;  %v300_v4 = vld [vmem:[#allocation6 + $0x60] ss:$8 sps:$4 sm:$0xff]  }
  0x1f   :  { %149 = vmatpush1.bf16.msra.mxu0 %v297_v2  ;;  %v301_v5 = vld [vmem:[#allocation6 + $0x54] ss:$8 sps:$4 sm:$0xff]   ;;  %v303_v6 = vld [vmem:[#allocation6 + $0x50] ss:$8 sps:$4 sm:$0xff]   ;;  %v304_v7 = vld [vmem:[#allocation6 + $0x44] ss:$8 sps:$4 sm:$0xff]  }
  0x20   :  { %150 = vmatprep.subr.bf16.mxu0 %v298_v3  ;;  %v306_v8 = vld [vmem:[#allocation6 + $0x40] ss:$8 sps:$4 sm:$0xff]   ;;  %v307_v9 = vld [vmem:[#allocation6 + $0x34] ss:$8 sps:$4 sm:$0xff]   ;;  %v309_v10 = vld [vmem:[#allocation6 + $0x30] ss:$8 sps:$4 sm:$0xff]  }
  0x21   :  { %v310_v11 = vld [vmem:[#allocation6 + $0x24] ss:$8 sps:$4 sm:$0xff]   ;;  %v312_v12 = vld [vmem:[#allocation6 + $0x20] ss:$8 sps:$4 sm:$0xff]   ;;  %v313_v13 = vld [vmem:[#allocation6 + $0x14] ss:$8 sps:$4 sm:$0xff]  }
  0x22   :  { %v315_v14 = vld [vmem:[#allocation6 + $0x10] ss:$8 sps:$4 sm:$0xff]   ;;  %v316_v15 = vld [vmem:[#allocation6 + $0x4] ss:$8 sps:$4 sm:$0xff]   ;;  %v318_v16 = vld [vmem:[#allocation6] ss:$8 sps:$4 sm:$0xff]  }
  0x23   :  { %151 = vmatpush1.bf16.msra.mxu0 %v300_v4  ;;  %v319_v17 = vld [vmem:[#allocation3] sm:$0xff]   ;;  %v225_v19 = vshrl.u32 %v224_v18, 7 }
  0x24   :  { %152 = vmatprep.subr.bf16.mxu0 %v301_v5  ;;  %v222_v21 = vld [vmem:[%s438_s2] sm:$0x3]  ;;  %s397_s2 = smov [#allocation8]  }
  0x25   :  { %v230_v20 = vsub.s32 1, %v225_v19  ;;  %v226_v31 = vsub.s32 0, %v225_v19  ;;  %s257_s26 = sshll.u32 %s397_s2, 4  ;;  %s258_s26 = int_to_ptr.vmem [resolvable:$true] %s257_s26 }
  0x26   :  { %s364_s27 = scalar_lea.vmem %s258_s26, 256  ;;  %p369_p11 = scmp.lt.s32.totalorder %s258_s26, %s258_s26 }
  0x27   :  { %153 = vmatpush1.bf16.msra.mxu0 %v303_v6  ;;  %v231_v22 = vrot.slane %v222_v21, %v230_v20  ;;  %v227_v32 = vrot.slane %v222_v21, %v226_v31  ;;  %p365_p10 = scmp.ne.s32.totalorder %s258_s26, %s364_s27  ;;  %p370_p12 = scmp.lt.s32.totalorder %s364_s27, %s364_s27 }
  0x28   :  { %154 = vmatprep.subr.bf16.mxu0 %v304_v7 }
  0x29   :  { %p371_p13 = por %p370_p12, %p369_p11 }
  0x2b   :  { %155 = vmatpush1.bf16.msra.mxu0 %v306_v8  ;;  %p372_p0 = pnand %p371_p13, %p365_p10 }
  0x2c   :  { %156 = vmatprep.subr.bf16.mxu0 %v307_v9 }
  0x2f   :  { %157 = vmatpush1.bf16.msra.mxu0 %v309_v10 }
  0x30   :  { %158 = vmatprep.subr.bf16.mxu0 %v310_v11 }
  0x33   :  { %159 = vmatpush1.bf16.msra.mxu0 %v312_v12 }
  0x34   :  { %160 = vmatprep.subr.bf16.mxu0 %v313_v13 }
  0x37   :  { %161 = vmatpush1.bf16.msra.mxu0 %v315_v14 }
  0x38   :  { %162 = vmatprep.subr.bf16.mxu0 %v316_v15 }
  0x3b   :  { %163 = vmatpush1.bf16.msra.mxu0 %v318_v16 }
  0x3e   :  { %181 = vmatmul.mubr.bf16.vlgmr.msra.gmra.mxu0 %v319_v17 }
  0xfe   :  { %v182_v23 = vpop.f32.mrf.mxu0 }
  0xff   :  { %v234_v36 = vadd.f32 %v227_v32, %v182_v23 }
 0x100   :  { %v184_v24 = vpop.f32.mrf.mxu0 }
 0x101   :  { %v235_v25 = vadd.f32 %v231_v22, %v184_v24 }
 0x102   :  { %v186_v26 = vpop.f32.mrf.mxu0 }
 0x103   :  { %v240_v27 = vmul.f32 0.70710677, %v235_v25  ;;  %v238_v34 = vmul.f32 0.5, %v235_v25  ;;  %v236_v42 = vadd.f32 %v227_v32, %v186_v26 }
 0x104   :  { %v188_v28 = vpop.f32.mrf.mxu0 }
 0x105   :  { %320 = verf.f32 %v240_v27  ;;  %v237_v29 = vadd.f32 %v231_v22, %v188_v28 }
 0x107   :  { %v241_v30 = vmul.f32 0.70710677, %v237_v29  ;;  %v239_v39 = vmul.f32 0.5, %v237_v29 }
 0x109   :  { %322 = verf.f32 %v241_v30 }
 0x112   :  { %v321_v33 = vpop.eup %320 }
 0x113   :  { %v244_v35 = vadd.f32 1.0, %v321_v33 }
 0x115   :  { %v246_v37 = vmul.f32 %v244_v35, %v238_v34 }
 0x116   :  { %v323_v38 = vpop.eup %322 }
 0x117   :  { %v245_v40 = vadd.f32 1.0, %v323_v38  ;;  %v248_v41 = vmul.f32 %v246_v37, %v234_v36 }
 0x119   :  { %v247_v43 = vmul.f32 %v245_v40, %v239_v39  ;;  %250 = vst [vmem:[#allocation8] sm:$0xff] %v248_v41 }
 0x11b   :  { %v249_v44 = vmul.f32 %v247_v43, %v236_v42 }
 0x11d   :  { %251 = vst [vmem:[#allocation8 + $0x8] sm:$0xff] %v249_v44 }
 0x11e   :  { %375 = shalt.err (!%p372_p0)
}
 0x11f   :  { %263 = dma.vmem_to_hbm [thread:$0]  %s258_s26, 256, %s439_s3, [#allocation5], %s394_s22, %s394_s22, %s395_s23  }
 0x120   :  { %388 = dma.done.wait [#allocation5], 256  }
 0x121   :  { %389 = vsyncadd [#allocation5], 4294967040 }
 0x122   :  { %267 = vsyncpa [#allocation4], 1 }
 0x123   :  { %268 = vsyncpa [#allocation7], 1 }
 0x124   :  { %269 = vsyncpa [#allocation5], 1 }

</bundles_post_ra>
